<compile_context>
chip_gen: v7x
topology: tpu7x:2x2x1
jax: 0.10.0
libtpu: 0.0.40
codegen_flags: <defaults>
</compile_context>

<pallas_src>
import functools

import jax
import jax.numpy as jnp
from jax import lax
from jax.experimental import pallas as pl
from jax.experimental.pallas import tpu as pltpu


def _neglog_kernel(x_ref, lab_ref, out_ref, *, is_logit: bool):
    """One batch tile in transposed (lane-dense) layout.

    x_ref:   (C, TB) f32 logits (or probabilities if not is_logit)
    lab_ref: (1, TB) i32 labels; -1 marks padded columns
    out_ref: (1, 1)  f32 SMEM partial sum for this tile
    """
    x = x_ref[...]
    lab = lab_ref[...]                                    # (1, TB) int32
    cls = lax.broadcasted_iota(jnp.int32, x.shape, 0)     # class idx per sublane
    onehot = (cls == lab).astype(jnp.float32)             # (C, TB)

    if is_logit:
        m = jnp.max(x, axis=0, keepdims=True)             # (1, TB) sublane reduce
        e = jnp.exp(x - m)
        inv_denom = pl.reciprocal(jnp.sum(e, axis=0, keepdims=True), approx=True)
        p_y = jnp.sum(e * onehot, axis=0, keepdims=True) * inv_denom
    else:
        p_y = jnp.sum(x * onehot, axis=0, keepdims=True)

    valid = (lab >= 0).astype(jnp.float32)                # 0 for padded columns
    p_safe = jnp.where(lab >= 0, p_y, 1.0)                # avoid div-by-0 on padding
    # Only the target class survives coeff = ((p - t) / p**2) * t.
    coeff = (p_safe - 1.0) / (p_safe * p_safe)
    clipped = jnp.clip(coeff, -1.0, 1.0)
    # TODO(synk): the PyTorch module print()s coeff/clipped max/min for
    # debugging; host-side prints are intentionally omitted.
    out_ref[0, 0] = jnp.sum(clipped * p_y * valid)


def _round_up(x: int, m: int) -> int:
    return (x + m - 1) // m * m


def _pick_batch_tile(b: int, c: int) -> int:
    # One logit block is (C, TB) f32 plus a (1, TB) i32 label block; Pallas
    # double-buffers each.  Keep 2 buffers * block bytes well under the 32 MiB
    # scoped-VMEM budget we request (conservative for v7x).
    target_block_bytes = 4 * 1024 * 1024
    tb = target_block_bytes // (4 * (c + 1))
    tb = max(128, (tb // 128) * 128)
    return min(tb, _round_up(b, 128))


def targets2labels(targets: jax.Array, n_classes: int) -> jax.Array:
    """Int32 class labels from either hard labels or one-hot targets."""
    if targets.ndim >= 2 and targets.shape[-1] == n_classes:
        # TODO(synk): genuinely soft (non-one-hot) (B, C) targets are not
        # supported by the target-class-only kernel; argmax recovers hard labels.
        return jnp.argmax(targets, axis=-1).astype(jnp.int32)
    return targets.astype(jnp.int32)


def neg_log_score(inputs_: jax.Array, targets: jax.Array,
                  is_logit: bool = True, block_batch: int | None = None) -> jax.Array:
    """Pallas implementation of NegLogScore.forward.

    inputs_: (B, C) float (logits if is_logit else probabilities)
    targets: (B,) int labels (or (B, C) one-hot)
    returns: scalar float32 loss
    """
    B, C = inputs_.shape
    labels = targets2labels(targets, C)

    tb = _pick_batch_tile(B, C) if block_batch is None else int(block_batch)
    b_pad = _round_up(B, tb)
    grid = (b_pad // tb,)

    # Lane-dense layout: classes on sublanes, batch on lanes.
    x_t = inputs_.astype(jnp.float32).T                   # (C, B)
    lab = labels.reshape(1, B)
    if b_pad != B:
        x_t = jnp.pad(x_t, ((0, 0), (0, b_pad - B)))
        lab = jnp.pad(lab, ((0, 0), (0, b_pad - B)), constant_values=-1)

    kernel = functools.partial(_neglog_kernel, is_logit=bool(is_logit))
    partials = pl.pallas_call(
        kernel,
        out_shape=jax.ShapeDtypeStruct((grid[0], 1), jnp.float32),
        grid_spec=pltpu.PrefetchScalarGridSpec(
            num_scalar_prefetch=0,
            grid=grid,
            in_specs=[
                pl.BlockSpec((C, tb), lambda i: (0, i)),   # logits (C, TB)
                pl.BlockSpec((1, tb), lambda i: (0, i)),   # labels (1, TB)
            ],
            out_specs=pl.BlockSpec((1, 1), lambda i: (i, 0),
                                   memory_space=pltpu.SMEM),
        ),
        compiler_params=pltpu.CompilerParams(
            dimension_semantics=("parallel",),
            vmem_limit_bytes=32 * 1024 * 1024,
        ),
    )(x_t, lab)

    # Final reduction + mean over the *original* batch size in plain JAX.
    return jnp.sum(partials) / jnp.float32(B)


def _reference(inputs_, targets, is_logit=True):
    """Pure-JAX reference matching the PyTorch forward exactly."""
    n_classes = inputs_.shape[1]
    t = jax.nn.one_hot(targets, n_classes, dtype=jnp.float32)
    p = jax.nn.softmax(inputs_, axis=-1) if is_logit else inputs_
    coeff = ((p - t) / p ** 2) * t
    clipped = jnp.clip(coeff, -1.0, 1.0)
    return jnp.mean(jnp.sum(clipped * p, axis=-1))


if __name__ == "__main__":
    key = jax.random.PRNGKey(0)
    k1, k2 = jax.random.split(key)

    # Small shapes; B=200 exercises padding (200 -> 256) and, with
    # block_batch=128, a 2-step "parallel" grid with per-tile partial sums.
    B, C = 200, 8
    logits = jax.random.normal(k1, (B, C), dtype=jnp.float32)
    labels = jax.random.randint(k2, (B,), 0, C, dtype=jnp.int32)

    ref = _reference(logits, labels)

    loss_auto = jax.block_until_ready(neg_log_score(logits, labels))
    loss_tiled = jax.block_until_ready(neg_log_score(logits, labels, block_batch=128))

    # Tolerance accounts for the approximate (EUP) reciprocal used in the
    # softmax denominator; any real bug would deviate far more than this.
    tol = dict(rtol=5e-3, atol=5e-3)
    assert jnp.allclose(loss_auto, ref, **tol), (loss_auto, ref)
    assert jnp.allclose(loss_tiled, ref, **tol), (loss_tiled, ref)

    print("KERNEL_OK")
</pallas_src>

<mosaic_0001>
module attributes {stable_mosaic.version = 11 : i64} {
  func.func @_neglog_kernel(%arg0: i32, %arg1: memref<8x256xf32, #tpu.memory_space<vmem>>, %arg2: memref<1x256xi32, #tpu.memory_space<vmem>>, %arg3: memref<1x1xf32, #tpu.memory_space<smem>>) attributes {dimension_semantics = [#tpu.dimension_semantics<parallel>], iteration_bounds = array<i64: 1>, scalar_prefetch = 0 : i64, scratch_operands = 0 : i64, tpu.core_type = #tpu.core_type<tc>, window_params = [{transform_indices = @transform_0, window_bounds = array<i64: 8, 256>}, {transform_indices = @transform_1, window_bounds = array<i64: 1, 256>}, {transform_indices = @transform_2, window_bounds = array<i64: 1, 1>}]} {
    %c0 = arith.constant 0 : index
    %c0_0 = arith.constant 0 : index
    %0 = vector.load %arg1[%c0, %c0_0] : memref<8x256xf32, #tpu.memory_space<vmem>>, vector<8x256xf32>
    %c0_1 = arith.constant 0 : index
    %c0_2 = arith.constant 0 : index
    %1 = vector.load %arg2[%c0_1, %c0_2] : memref<1x256xi32, #tpu.memory_space<vmem>>, vector<1x256xi32>
    %2 = tpu.iota {dimensions = array<i32: 0>} : vector<8x256xi32>
    %3 = vector.broadcast %1 : vector<1x256xi32> to vector<8x256xi32>
    %4 = arith.cmpi eq, %2, %3 : vector<8x256xi32>
    %5 = arith.extui %4 : vector<8x256xi1> to vector<8x256xi32>
    %6 = arith.sitofp %5 : vector<8x256xi32> to vector<8x256xf32>
    %cst = arith.constant dense<0xFF800000> : vector<256xf32>
    %7 = vector.multi_reduction <maximumf>, %0, %cst [0] : vector<8x256xf32> to vector<256xf32>
    %8 = vector.shape_cast %7 : vector<256xf32> to vector<1x256xf32>
    %9 = vector.broadcast %8 : vector<1x256xf32> to vector<8x256xf32>
    %10 = arith.subf %0, %9 : vector<8x256xf32>
    %11 = math.exp %10 : vector<8x256xf32>
    %cst_3 = arith.constant dense<0.000000e+00> : vector<256xf32>
    %12 = vector.multi_reduction <add>, %11, %cst_3 [0] : vector<8x256xf32> to vector<256xf32>
    %13 = vector.shape_cast %12 : vector<256xf32> to vector<1x256xf32>
    %14 = tpu.reciprocal %13 {approx = true} : vector<1x256xf32> -> vector<1x256xf32>
    %15 = arith.mulf %11, %6 : vector<8x256xf32>
    %cst_4 = arith.constant dense<0.000000e+00> : vector<256xf32>
    %16 = vector.multi_reduction <add>, %15, %cst_4 [0] : vector<8x256xf32> to vector<256xf32>
    %17 = vector.shape_cast %16 : vector<256xf32> to vector<1x256xf32>
    %18 = arith.mulf %17, %14 : vector<1x256xf32>
    %c0_i32 = arith.constant 0 : i32
    %19 = vector.broadcast %c0_i32 : i32 to vector<1x256xi32>
    %20 = arith.cmpi sge, %1, %19 : vector<1x256xi32>
    %21 = arith.extui %20 : vector<1x256xi1> to vector<1x256xi32>
    %22 = arith.sitofp %21 : vector<1x256xi32> to vector<1x256xf32>
    %c0_i32_5 = arith.constant 0 : i32
    %23 = vector.broadcast %c0_i32_5 : i32 to vector<1x256xi32>
    %24 = arith.cmpi sge, %1, %23 : vector<1x256xi32>
    %cst_6 = arith.constant 1.000000e+00 : f32
    %25 = vector.broadcast %cst_6 : f32 to vector<1x256xf32>
    %26 = arith.select %24, %18, %25 : vector<1x256xi1>, vector<1x256xf32>
    %cst_7 = arith.constant 1.000000e+00 : f32
    %27 = vector.broadcast %cst_7 : f32 to vector<1x256xf32>
    %28 = arith.subf %26, %27 : vector<1x256xf32>
    %29 = arith.mulf %26, %26 : vector<1x256xf32>
    %30 = arith.divf %28, %29 : vector<1x256xf32>
    %cst_8 = arith.constant -1.000000e+00 : f32
    %cst_9 = arith.constant 1.000000e+00 : f32
    %31 = vector.broadcast %cst_8 : f32 to vector<1x256xf32>
    %32 = arith.maximumf %31, %30 : vector<1x256xf32>
    %33 = vector.broadcast %cst_9 : f32 to vector<1x256xf32>
    %34 = arith.minimumf %33, %32 : vector<1x256xf32>
    %35 = arith.mulf %34, %18 : vector<1x256xf32>
    %36 = arith.mulf %35, %22 : vector<1x256xf32>
    %37 = vector.shape_cast %36 : vector<1x256xf32> to vector<1x1x256xf32>
    %cst_10 = arith.constant dense<0.000000e+00> : vector<1xf32>
    %38 = vector.multi_reduction <add>, %37, %cst_10 [1, 2] : vector<1x1x256xf32> to vector<1xf32>
    %39 = vector.shape_cast %38 : vector<1xf32> to vector<1x1x1xf32>
    %40 = vector.extract %39[0, 0, 0] : f32 from vector<1x1x1xf32>
    %c0_11 = arith.constant 0 : index
    %c0_12 = arith.constant 0 : index
    %41 = memref.load %arg3[%c0_11, %c0_12] : memref<1x1xf32, #tpu.memory_space<smem>>
    memref.store %40, %arg3[%c0_11, %c0_12] : memref<1x1xf32, #tpu.memory_space<smem>>
    return
  }
  func.func @transform_0(%arg0: i32) -> (i32, i32) {
    %c0_i32 = arith.constant 0 : i32
    %c0_i32_0 = arith.constant 0 : i32
    return %c0_i32, %arg0 : i32, i32
  }
  func.func @transform_1(%arg0: i32) -> (i32, i32) {
    %c0_i32 = arith.constant 0 : i32
    %c0_i32_0 = arith.constant 0 : i32
    return %c0_i32, %arg0 : i32, i32
  }
  func.func @transform_2(%arg0: i32) -> (i32, i32) {
    %c0_i32 = arith.constant 0 : i32
    %c0_i32_0 = arith.constant 0 : i32
    return %arg0, %c0_i32 : i32, i32
  }
}

</mosaic_0001>

<bundles_post_ra>
// kernel: tpu_custom_call.1
= control target key start
LH: loop header
LB: loop body
LE: loop exit
PB: predicated region body
PF: predicated region fallthrough
CT: control target
= control target key end

     0   :  { %7 = vsyncpa [#allocation3], 0  ;;  %s279_s0 = inlined_call_operand.hbm [shape: f32[8,256], index: 0, kind: input, shape index: {}]   ;;  %s280_s1 = inlined_call_operand.vmem [shape: s32[1,256], index: 1, kind: input, shape index: {}]   ;;  %s281_s2 = inlined_call_operand.hbm [shape: f32[1,1], index: 2, kind: output, shape index: {}]  }
   0x1   :  { %8 = vsyncpa [#allocation4], 0  ;;  %s218_s9 = smov [#allocation2]   ;;  %s182_s13 = scalar_lea.hbm %s279_s0, 256 }
   0x2   :  { %s15_s10 = sshll.u32 %s218_s9, 4  ;;  %p183_p0 = scmp.ne.s32.totalorder %s279_s0, %s182_s13  ;;  %s16_s10 = int_to_ptr.vmem [resolvable:$true] %s15_s10 }
   0x3   :  { %p186_p1 = scmp.lt.u32.totalorder %s182_s13, %s279_s0 }
   0x5   :  { %p188_p2 = pnand %p186_p1, %p183_p0 }
   0x7   :  { %191 = shalt.err (!%p188_p2)
}
   0x8   :  { %s192_s18 = scalar_lea.vmem %s16_s10, 256  ;;  %p197_p4 = scmp.lt.s32.totalorder %s16_s10, %s16_s10 }
   0x9   :  { %p193_p3 = scmp.ne.s32.totalorder %s16_s10, %s192_s18  ;;  %p198_p5 = scmp.lt.s32.totalorder %s192_s18, %s192_s18 }
   0xb   :  { %p199_p6 = por %p198_p5, %p197_p4 }
   0xd   :  { %p200_p7 = pnand %p199_p6, %p193_p3 }
   0xf   :  { %203 = shalt.err (!%p200_p7)
}
  0x10   :  { %18 = dma.hbm_to_vmem [thread:$0]  %s279_s0, 256, %s16_s10, [#allocation3]  }
  0x11   :  { %214 = dma.done.wait [#allocation3], 256  }
  0x12   :  { %215 = vsyncadd [#allocation3], 4294967040  ;;  %v24_v0 = vld [vmem:[#allocation2] sm:$0xff]  ;;  %v25_v1 = vld [vmem:[#allocation2 + $0x8] sm:$0xff]  ;;  %v27_v8 = vlaneseq  ;;  %v219_v25 = vmov 0.0   ;;  %vm132_vm3 = vcmask 1040384  }
  0x13   :  { %v43_v2 = vrot.slane %v24_v0, 4  ;;  %v49_v3 = vrot.slane %v25_v1, 4  ;;  %v26_v20 = vld [vmem:[%s280_s1] sm:$0x3]  ;;  %v220_v54 = vmov 1966171168  }
  0x14   :  { %v249_v13 = vshrl.u32 %v27_v8, 7  ;;  %v98_v55 = vunpack.c.l.s4 %v220_v54  ;;  %vm91_vm2 = vcmp.ge.s32.totalorder %v26_v20, 0  ;;  %s204_s24 = scalar_lea.hbm %s281_s2, 16 }
  0x15   :  { %v44_v4 = vmax.f32 %v24_v0, %v43_v2  ;;  %v50_v5 = vmax.f32 %v25_v1, %v49_v3  ;;  %p205_p8 = scmp.ne.s32.totalorder %s281_s2, %s204_s24  ;;  %p208_p9 = scmp.lt.u32.totalorder %s204_s24, %s281_s2 }
  0x16   :  { %v31_v18 = vsub.s32 0, %v249_v13  ;;  %v35_v19 = vsub.s32 1, %v249_v13  ;;  %v99_v58 = vunpack.c.0.s8 %v98_v55 }
  0x17   :  { %v45_v6 = vrot.slane %v44_v4, 2  ;;  %v51_v7 = vrot.slane %v50_v5, 2  ;;  %p210_p10 = pnand %p208_p9, %p205_p8 }
  0x18   :  { %v32_v23 = vrot.slane %v26_v20, %v31_v18  ;;  %v36_v24 = vrot.slane %v26_v20, %v35_v19  ;;  %v102_v63 = vsub.s32 %v99_v58, %v249_v13 }
  0x19   :  { %v46_v9 = vmax.f32 %v44_v4, %v45_v6  ;;  %v52_v10 = vmax.f32 %v50_v5, %v51_v7 }
  0x1a   :  { %vm37_vm0 = vcmp.eq.s32.totalorder %v249_v13, %v32_v23  ;;  %vm38_vm1 = vcmp.eq.s32.totalorder %v249_v13, %v36_v24 }
  0x1b   :  { %v47_v11 = vrot.slane %v46_v9, 1  ;;  %v53_v12 = vrot.slane %v52_v10, 1  ;;  %v161_v26 = vsel %vm37_vm0, 1.0, %v219_v25  ;;  %v162_v27 = vsel %vm38_vm1, 1.0, %v219_v25 }
  0x1d   :  { %v48_v14 = vmax.f32 %v46_v9, %v47_v11  ;;  %v54_v15 = vmax.f32 %v52_v10, %v53_v12  ;;  %v163_v9 = vsel %vm91_vm2, 1.0, %v219_v25 }
  0x1f   :  { %v55_v16 = vsub.f32 %v24_v0, %v48_v14  ;;  %v56_v17 = vsub.f32 %v25_v1, %v54_v15 }
  0x21   :  { %v57_v21 = vmul.f32 1.442695, %v55_v16  ;;  %v59_v22 = vmul.f32 1.442695, %v56_v17 }
  0x23   :  { %172 = vpow2.f32 %v57_v21 }
  0x24   :  { %174 = vpow2.f32 %v59_v22 }
  0x2d   :  { %v173_v28 = vpop.eup %172 }
  0x2e   :  { %v175_v29 = vpop.eup %174  ;;  %v61_v30 = vrot.slane %v173_v28, 4  ;;  %v75_v31 = vmul.f32 %v173_v28, %v161_v26 }
  0x2f   :  { %v67_v32 = vrot.slane %v175_v29, 4  ;;  %v76_v33 = vmul.f32 %v175_v29, %v162_v27 }
  0x30   :  { %v62_v34 = vadd.f32 %v173_v28, %v61_v30  ;;  %v77_v35 = vrot.slane %v75_v31, 4 }
  0x31   :  { %v68_v36 = vadd.f32 %v175_v29, %v67_v32  ;;  %v83_v37 = vrot.slane %v76_v33, 4 }
  0x32   :  { %v63_v38 = vrot.slane %v62_v34, 2  ;;  %v78_v39 = vadd.f32 %v77_v35, %v75_v31 }
  0x33   :  { %v69_v40 = vrot.slane %v68_v36, 2  ;;  %v84_v41 = vadd.f32 %v83_v37, %v76_v33 }
  0x34   :  { %v64_v42 = vadd.f32 %v63_v38, %v62_v34  ;;  %v79_v44 = vrot.slane %v78_v39, 2 }
  0x35   :  { %v70_v43 = vadd.f32 %v69_v40, %v68_v36  ;;  %v85_v46 = vrot.slane %v84_v41, 2 }
  0x36   :  { %v65_v45 = vrot.slane %v64_v42, 1  ;;  %v80_v50 = vadd.f32 %v79_v44, %v78_v39 }
  0x37   :  { %v71_v47 = vrot.slane %v70_v43, 1  ;;  %v86_v51 = vadd.f32 %v85_v46, %v84_v41 }
  0x38   :  { %v66_v48 = vadd.f32 %v65_v45, %v64_v42  ;;  %v81_v52 = vrot.slane %v80_v50, 1 }
  0x39   :  { %v72_v49 = vadd.f32 %v71_v47, %v70_v43  ;;  %v87_v53 = vrot.slane %v86_v51, 1 }
  0x3a   :  { %176 = vrcp.f32 %v66_v48  ;;  %v82_v56 = vadd.f32 %v81_v52, %v80_v50 }
  0x3b   :  { %178 = vrcp.f32 %v72_v49  ;;  %v88_v57 = vadd.f32 %v87_v53, %v86_v51 }
  0x44   :  { %v177_v59 = vpop.eup %176 }
  0x45   :  { %v179_v60 = vpop.eup %178  ;;  %v89_v61 = vmul.f32 %v177_v59, %v82_v56 }
  0x46   :  { %v90_v62 = vmul.f32 %v179_v60, %v88_v57 }
  0x48   :  { %v96_v0 = vcombine.low %v89_v61, %v90_v62 }
  0x4a   :  { %v103_v1 = vrot.slane %v96_v0, %v102_v63 }
  0x4c   :  { %v110_v2 = vrot.slane %v103_v1, %v102_v63 }
  0x4e   :  { %v112_v3 = vsel %vm91_vm2, %v110_v2, 1.0 }
  0x4f   :  { %v114_v4 = vmul.f32 %v112_v3, %v112_v3  ;;  %v164_v5 = vadd.f32 -1.0, %v112_v3 }
  0x51   :  { %180 = vrcp.f32 %v114_v4 }
  0x5b   :  { %v181_v6 = vpop.eup %180 }
  0x5c   :  { %v116_v7 = vmul.f32 %v181_v6, %v164_v5 }
  0x5e   :  { %v165_v8 = vclamps-f32 %v116_v7, 1.0 }
  0x60   :  { %v119_v10 = vmul.f32 %v165_v8, %v110_v2 }
  0x62   :  { %v120_v11 = vmul.f32 %v163_v9, %v119_v10 }
  0x64   :  { %v125_v12 = vrot.slane %v120_v11, %v31_v18  ;;  %v129_v14 = vrot.slane %v120_v11, %v35_v19 }
  0x66   :  { %v133_v15 = vsel %vm132_vm3, %v125_v12, 0.0  ;;  %v134_v16 = vsel %vm132_vm3, %v129_v14, 0.0 }
  0x67   :  { %v135_v17 = vadd.f32 %v134_v16, %v133_v15 }
  0x69   :  { %136 = vadd.xlane.f32.xlu0 %v135_v17 }
  0xf6   :  { %v137_v20 = vpop.xlane.xlu0 %136 }
  0xf7   :  { %v138_v21 = vrot.slane %v137_v20, 4 }
  0xf9   :  { %v139_v22 = vadd.f32 %v138_v21, %v137_v20 }
  0xfb   :  { %v140_v23 = vrot.slane %v139_v22, 2 }
  0xfd   :  { %v141_v24 = vadd.f32 %v140_v23, %v139_v22 }
  0xff   :  { %v142_v26 = vrot.slane %v141_v24, 1 }
 0x101   :  { %v143_v25 = vadd.f32 %v142_v26, %v141_v24 }
 0x103   :  { %166 = vpush %v143_v25 }
 0x134   :  { %s167_s1 = spop %166 }
 0x135   :  { %146 = sst [smem:[#allocation5]] %s167_s1 }
 0x136   :  { %213 = shalt.err (!%p210_p10)
}
 0x137   :  { %s221_s29 = smov [#allocation5]  }
 0x138   :  { %154 = dma.smem_to_hbm %s221_s29, 16, %s281_s2, [#allocation4]  }
 0x139   :  { %216 = dma.done.wait [#allocation4], 16  }
 0x13a   :  { %217 = vsyncadd [#allocation4], 4294967280 }
 0x13b   :  { %158 = sfence }
 0x13c   :  { %159 = vsyncpa [#allocation3], 1 }
 0x13d   :  { %160 = vsyncpa [#allocation4], 1 }

</bundles_post_ra>
